<compile_context>
chip_gen: v7x
topology: tpu7x:2x2x1
jax: 0.10.0
libtpu: 0.0.40
codegen_flags: <defaults>
</compile_context>

<pallas_src>
import math
import functools

import jax
import jax.numpy as jnp
from jax import lax
from jax.experimental import pallas as pl
from jax.experimental.pallas import tpu as pltpu


def _mha_kernel(*refs, num_heads, d_k, d_model, seq, bb, self_attn):
    """One grid step: `bb` batches, activations already flat [bb*seq, D]."""
    if self_attn:
        x_ref, w_ref, bin_ref, b0_ref, o_ref = refs
        xq = x_ref[...]
        xk = xq
        xv = xq
    else:
        q_ref, k_ref, v_ref, w_ref, bin_ref, b0_ref, o_ref = refs
        xq = q_ref[...]
        xk = k_ref[...]
        xv = v_ref[...]

    in_dtype = xq.dtype
    b0 = b0_ref[...].astype(jnp.float32)                       # [1, D]

    # Per-batch f32 accumulators for the output projection (Python list:
    # single trace, no scratch needed).
    acc = [jnp.zeros((seq, d_model), jnp.float32) for _ in range(bb)]

    # Static unroll over heads; weights are indexed on leading dims (free view).
    for h in range(num_heads):
        # Per-head projections over ALL bb batches at once: [bb*S, D] @ [D, d_k].
        # The 1/sqrt(d_k) scale is already folded into w_all[0]/b_in[0].
        qh = (jnp.dot(xq, w_ref[0, h], preferred_element_type=jnp.float32)
              + bin_ref[0, h]).astype(in_dtype)                 # [bb*S, d_k]
        kh = (jnp.dot(xk, w_ref[1, h], preferred_element_type=jnp.float32)
              + bin_ref[1, h]).astype(in_dtype)
        vh = (jnp.dot(xv, w_ref[2, h], preferred_element_type=jnp.float32)
              + bin_ref[2, h]).astype(in_dtype)
        w0h = w_ref[3, h]                                       # [D, d_k] (transposed)

        for b in range(bb):
            lo = b * seq                                        # sublane-aligned
            qb = qh[lo:lo + seq]
            kb = kh[lo:lo + seq]
            vb = vh[lo:lo + seq]

            # scores = qb @ kb^T via MXU-native transposed-RHS contraction.
            s = lax.dot_general(qb, kb, (((1,), (1,)), ((), ())),
                                preferred_element_type=jnp.float32)    # [S, S]

            # Numerically-stable softmax (exact division); dropout = eval identity.
            m = jnp.max(s, axis=-1, keepdims=True)
            e = jnp.exp(s - m)
            p = e / jnp.sum(e, axis=-1, keepdims=True)

            pv = jnp.dot(p.astype(vb.dtype), vb,
                         preferred_element_type=jnp.float32)           # [S, d_k]

            # Output projection accumulated per head (no concat, no lane slices):
            # pv @ w0_h^T with w0_h stored transposed as [D, d_k].
            acc[b] = acc[b] + lax.dot_general(
                pv.astype(in_dtype), w0h, (((1,), (1,)), ((), ())),
                preferred_element_type=jnp.float32)                    # [S, D]

    for b in range(bb):
        lo = b * seq
        o_ref[lo:lo + seq, :] = (acc[b] + b0).astype(o_ref.dtype)


def multihead_attention(q, k, v, params, *, num_heads):
    B, S, D = q.shape
    d_k = D // num_heads
    wq, bq, wk, bk, wv, bv, w0, b0 = params

    # ---- one-time host-side weight prep (runs outside the kernel) ----
    # PyTorch Linear: y = x @ W.T + b with W in [out, in] layout.  Pre-transpose
    # to [in, out], split per head, and fold the 1/sqrt(d_k) scale into the Q
    # projection (exact rewrite).
    scale = 1.0 / math.sqrt(d_k)

    def split_in(w_t):  # [D_in, D_out] -> [H, D_in, d_k]
        return w_t.reshape(D, num_heads, d_k).transpose(1, 0, 2)

    w_all = jnp.stack([
        split_in(wq.T * scale),                       # q (scale folded in)
        split_in(wk.T),                               # k
        split_in(wv.T),                               # v
        # output projection per head, stored transposed: w_all[3, h] = w0[:, h*d_k:(h+1)*d_k]
        w0.reshape(D, num_heads, d_k).transpose(1, 0, 2),
    ])                                                # [4, H, D, d_k]

    b_in = jnp.stack([
        (bq * scale).reshape(num_heads, 1, d_k),
        bk.reshape(num_heads, 1, d_k),
        bv.reshape(num_heads, 1, d_k),
    ])                                                # [3, H, 1, d_k]
    b0r = b0.reshape(1, D)

    # ---- batch blocking: fold batches into the projection matmuls while
    # keeping 2 "parallel" grid steps (v7x has 2 TensorCores; don't collapse
    # to grid=(1,)).  At B=2 each step is one batch; at B>=4 each step folds
    # B/2 batches into a single [bb*S, D] projection matmul.
    self_attn = (q is k) and (k is v)
    if B >= 2 and B % 2 == 0 and S % 8 == 0:
        steps, bb = 2, B // 2
    else:
        steps, bb = B, 1

    # Flatten activations on the host so the kernel sees lane-dense 2-D tiles
    # directly (no in-kernel reshape).
    qf = q.reshape(B * S, D)

    act_spec = pl.BlockSpec((bb * S, D), lambda i: (i, 0))
    w_spec = pl.BlockSpec(tuple(w_all.shape), lambda i: (0, 0, 0, 0))
    bin_spec = pl.BlockSpec(tuple(b_in.shape), lambda i: (0, 0, 0, 0))
    b0_spec = pl.BlockSpec((1, D), lambda i: (0, 0))

    kernel = functools.partial(
        _mha_kernel, num_heads=num_heads, d_k=d_k, d_model=D,
        seq=S, bb=bb, self_attn=self_attn)

    if self_attn:
        inputs = (qf, w_all, b_in, b0r)
        in_specs = [act_spec, w_spec, bin_spec, b0_spec]
    else:
        kf = k.reshape(B * S, D)
        vf = v.reshape(B * S, D)
        inputs = (qf, kf, vf, w_all, b_in, b0r)
        in_specs = [act_spec, act_spec, act_spec, w_spec, bin_spec, b0_spec]

    out = pl.pallas_call(
        kernel,
        out_shape=jax.ShapeDtypeStruct((B * S, D), q.dtype),
        grid_spec=pltpu.PrefetchScalarGridSpec(
            num_scalar_prefetch=0,
            grid=(steps,),
            in_specs=in_specs,
            out_specs=act_spec,
        ),
        compiler_params=pltpu.CompilerParams(
            dimension_semantics=("parallel",)),
    )(*inputs)

    return out.reshape(B, S, D)


def reference(q, k, v, params, *, num_heads):
    """Pure-JAX reference mirroring the PyTorch forward (eval mode)."""
    B, S, D = q.shape
    d_k = D // num_heads
    wq, bq, wk, bk, wv, bv, w0, b0 = params

    def lin(x, w, b):
        return x @ w.T + b

    qp = lin(q, wq, bq).reshape(B, S, num_heads, d_k).transpose(0, 2, 1, 3)
    kp = lin(k, wk, bk).reshape(B, S, num_heads, d_k).transpose(0, 2, 1, 3)
    vp = lin(v, wv, bv).reshape(B, S, num_heads, d_k).transpose(0, 2, 1, 3)

    scores = jnp.einsum("bhqd,bhkd->bhqk", qp, kp) / math.sqrt(d_k)
    p = jax.nn.softmax(scores, axis=-1)
    av = jnp.einsum("bhqk,bhkd->bhqd", p, vp)
    concat = av.transpose(0, 2, 1, 3).reshape(B, S, D)
    return lin(concat, w0, b0)


if __name__ == "__main__":
    # config: d_model=32, num_heads=4, drop_out_rate=0.1 (eval-mode identity)
    B, S, D, H = 2, 8, 32, 4

    key = jax.random.PRNGKey(0)
    keys = jax.random.split(key, 12)

    q = jax.random.normal(keys[0], (B, S, D), dtype=jnp.float32)
    k = jax.random.normal(keys[1], (B, S, D), dtype=jnp.float32)
    v = jax.random.normal(keys[2], (B, S, D), dtype=jnp.float32)

    def init_linear(kw, kb, fan_in, fan_out):
        bound = 1.0 / math.sqrt(fan_in)
        w = jax.random.uniform(kw, (fan_out, fan_in), jnp.float32, -bound, bound)
        b = jax.random.uniform(kb, (fan_out,), jnp.float32, -bound, bound)
        return w, b

    wq, bq = init_linear(keys[3], keys[4], D, D)
    wk, bk = init_linear(keys[5], keys[6], D, D)
    wv, bv = init_linear(keys[7], keys[8], D, D)
    w0, b0 = init_linear(keys[9], keys[10], D, D)
    params = (wq, bq, wk, bk, wv, bv, w0, b0)

    tol = dict(atol=1e-4, rtol=1e-4)

    # 1) General cross-attention path (distinct q/k/v): grid = 2 parallel steps.
    out = jax.block_until_ready(multihead_attention(q, k, v, params, num_heads=H))
    ref = reference(q, k, v, params, num_heads=H)
    assert out.shape == (B, S, D)
    assert jnp.allclose(out, ref, **tol), (
        f"cross-attn max abs err = {jnp.max(jnp.abs(out - ref))}")

    # 2) Self-attention fast path (q is k is v): single fused activation operand.
    out_sa = jax.block_until_ready(multihead_attention(q, q, q, params, num_heads=H))
    ref_sa = reference(q, q, q, params, num_heads=H)
    assert jnp.allclose(out_sa, ref_sa, **tol), (
        f"self-attn max abs err = {jnp.max(jnp.abs(out_sa - ref_sa))}")

    # 3) Batch-fold path (B=4 -> 2 parallel steps x 2 batches folded per matmul).
    q4 = jnp.concatenate([q, q + 0.5], axis=0)
    k4 = jnp.concatenate([k, k - 0.25], axis=0)
    v4 = jnp.concatenate([v, v * 1.5], axis=0)
    out4 = jax.block_until_ready(multihead_attention(q4, k4, v4, params, num_heads=H))
    ref4 = reference(q4, k4, v4, params, num_heads=H)
    assert jnp.allclose(out4, ref4, **tol), (
        f"batch-fold max abs err = {jnp.max(jnp.abs(out4 - ref4))}")

    print("KERNEL_OK")
</pallas_src>

<mosaic_0001>
module attributes {stable_mosaic.version = 11 : i64} {
  func.func @_mha_kernel(%arg0: i32, %arg1: memref<8x32xf32, #tpu.memory_space<vmem>>, %arg2: memref<8x32xf32, #tpu.memory_space<vmem>>, %arg3: memref<8x32xf32, #tpu.memory_space<vmem>>, %arg4: memref<4x4x32x8xf32, #tpu.memory_space<vmem>>, %arg5: memref<3x4x1x8xf32, #tpu.memory_space<vmem>>, %arg6: memref<1x32xf32, #tpu.memory_space<vmem>>, %arg7: memref<8x32xf32, #tpu.memory_space<vmem>>) attributes {dimension_semantics = [#tpu.dimension_semantics<parallel>], iteration_bounds = array<i64: 2>, scalar_prefetch = 0 : i64, scratch_operands = 0 : i64, tpu.core_type = #tpu.core_type<tc>, window_params = [{transform_indices = @transform_0, window_bounds = array<i64: 8, 32>}, {transform_indices = @transform_1, window_bounds = array<i64: 8, 32>}, {transform_indices = @transform_2, window_bounds = array<i64: 8, 32>}, {pipeline_mode = #tpu.pipeline_mode<synchronous>, transform_indices = @transform_3, window_bounds = array<i64: 4, 4, 32, 8>}, {pipeline_mode = #tpu.pipeline_mode<synchronous>, transform_indices = @transform_4, window_bounds = array<i64: 3, 4, 1, 8>}, {pipeline_mode = #tpu.pipeline_mode<synchronous>, transform_indices = @transform_5, window_bounds = array<i64: 1, 32>}, {transform_indices = @transform_6, window_bounds = array<i64: 8, 32>}]} {
    %c0 = arith.constant 0 : index
    %c0_0 = arith.constant 0 : index
    %0 = vector.load %arg1[%c0, %c0_0] : memref<8x32xf32, #tpu.memory_space<vmem>>, vector<8x32xf32>
    %c0_1 = arith.constant 0 : index
    %c0_2 = arith.constant 0 : index
    %1 = vector.load %arg2[%c0_1, %c0_2] : memref<8x32xf32, #tpu.memory_space<vmem>>, vector<8x32xf32>
    %c0_3 = arith.constant 0 : index
    %c0_4 = arith.constant 0 : index
    %2 = vector.load %arg3[%c0_3, %c0_4] : memref<8x32xf32, #tpu.memory_space<vmem>>, vector<8x32xf32>
    %c0_5 = arith.constant 0 : index
    %c0_6 = arith.constant 0 : index
    %3 = vector.load %arg6[%c0_5, %c0_6] : memref<1x32xf32, #tpu.memory_space<vmem>>, vector<1x32xf32>
    %cst = arith.constant 0.000000e+00 : f32
    %4 = vector.broadcast %cst : f32 to vector<8x32xf32>
    %c0_7 = arith.constant 0 : index
    %c0_8 = arith.constant 0 : index
    %c0_9 = arith.constant 0 : index
    %c0_10 = arith.constant 0 : index
    %5 = vector.load %arg4[%c0_7, %c0_8, %c0_9, %c0_10] : memref<4x4x32x8xf32, #tpu.memory_space<vmem>>, vector<1x1x32x8xf32>
    %6 = vector.shape_cast %5 : vector<1x1x32x8xf32> to vector<32x8xf32>
    %cst_11 = arith.constant dense<0.000000e+00> : vector<8x8xf32>
    %7 = tpu.matmul %0, %6, %cst_11 {dimension_numbers = #tpu.dot_dimension_numbers<[1], [0], [0], [1], [0, 0, 1, 1], [], []>} : vector<8x32xf32>, vector<32x8xf32>, vector<8x8xf32> -> vector<8x8xf32>
    %c0_12 = arith.constant 0 : index
    %c0_13 = arith.constant 0 : index
    %c0_14 = arith.constant 0 : index
    %c0_15 = arith.constant 0 : index
    %8 = vector.load %arg5[%c0_12, %c0_13, %c0_14, %c0_15] : memref<3x4x1x8xf32, #tpu.memory_space<vmem>>, vector<1x1x1x8xf32>
    %9 = vector.shape_cast %8 : vector<1x1x1x8xf32> to vector<1x8xf32>
    %10 = vector.broadcast %9 : vector<1x8xf32> to vector<8x8xf32>
    %11 = arith.addf %7, %10 : vector<8x8xf32>
    %c1 = arith.constant 1 : index
    %c0_16 = arith.constant 0 : index
    %c0_17 = arith.constant 0 : index
    %c0_18 = arith.constant 0 : index
    %12 = vector.load %arg4[%c1, %c0_16, %c0_17, %c0_18] : memref<4x4x32x8xf32, #tpu.memory_space<vmem>>, vector<1x1x32x8xf32>
    %13 = vector.shape_cast %12 : vector<1x1x32x8xf32> to vector<32x8xf32>
    %cst_19 = arith.constant dense<0.000000e+00> : vector<8x8xf32>
    %14 = tpu.matmul %1, %13, %cst_19 {dimension_numbers = #tpu.dot_dimension_numbers<[1], [0], [0], [1], [0, 0, 1, 1], [], []>} : vector<8x32xf32>, vector<32x8xf32>, vector<8x8xf32> -> vector<8x8xf32>
    %c1_20 = arith.constant 1 : index
    %c0_21 = arith.constant 0 : index
    %c0_22 = arith.constant 0 : index
    %c0_23 = arith.constant 0 : index
    %15 = vector.load %arg5[%c1_20, %c0_21, %c0_22, %c0_23] : memref<3x4x1x8xf32, #tpu.memory_space<vmem>>, vector<1x1x1x8xf32>
    %16 = vector.shape_cast %15 : vector<1x1x1x8xf32> to vector<1x8xf32>
    %17 = vector.broadcast %16 : vector<1x8xf32> to vector<8x8xf32>
    %18 = arith.addf %14, %17 : vector<8x8xf32>
    %c2 = arith.constant 2 : index
    %c0_24 = arith.constant 0 : index
    %c0_25 = arith.constant 0 : index
    %c0_26 = arith.constant 0 : index
    %19 = vector.load %arg4[%c2, %c0_24, %c0_25, %c0_26] : memref<4x4x32x8xf32, #tpu.memory_space<vmem>>, vector<1x1x32x8xf32>
    %20 = vector.shape_cast %19 : vector<1x1x32x8xf32> to vector<32x8xf32>
    %cst_27 = arith.constant dense<0.000000e+00> : vector<8x8xf32>
    %21 = tpu.matmul %2, %20, %cst_27 {dimension_numbers = #tpu.dot_dimension_numbers<[1], [0], [0], [1], [0, 0, 1, 1], [], []>} : vector<8x32xf32>, vector<32x8xf32>, vector<8x8xf32> -> vector<8x8xf32>
    %c2_28 = arith.constant 2 : index
    %c0_29 = arith.constant 0 : index
    %c0_30 = arith.constant 0 : index
    %c0_31 = arith.constant 0 : index
    %22 = vector.load %arg5[%c2_28, %c0_29, %c0_30, %c0_31] : memref<3x4x1x8xf32, #tpu.memory_space<vmem>>, vector<1x1x1x8xf32>
    %23 = vector.shape_cast %22 : vector<1x1x1x8xf32> to vector<1x8xf32>
    %24 = vector.broadcast %23 : vector<1x8xf32> to vector<8x8xf32>
    %25 = arith.addf %21, %24 : vector<8x8xf32>
    %c3 = arith.constant 3 : index
    %c0_32 = arith.constant 0 : index
    %c0_33 = arith.constant 0 : index
    %c0_34 = arith.constant 0 : index
    %26 = vector.load %arg4[%c3, %c0_32, %c0_33, %c0_34] : memref<4x4x32x8xf32, #tpu.memory_space<vmem>>, vector<1x1x32x8xf32>
    %27 = vector.shape_cast %26 : vector<1x1x32x8xf32> to vector<32x8xf32>
    %cst_35 = arith.constant dense<0.000000e+00> : vector<8x8xf32>
    %28 = tpu.matmul %11, %18, %cst_35 {dimension_numbers = #tpu.dot_dimension_numbers<[1], [1], [0], [0], [0, 0, 1, 0], [], []>} : vector<8x8xf32>, vector<8x8xf32>, vector<8x8xf32> -> vector<8x8xf32>
    %cst_36 = arith.constant dense<0xFF800000> : vector<8xf32>
    %29 = vector.multi_reduction <maximumf>, %28, %cst_36 [1] : vector<8x8xf32> to vector<8xf32>
    %30 = vector.shape_cast %29 : vector<8xf32> to vector<8x1xf32>
    %31 = vector.broadcast %30 : vector<8x1xf32> to vector<8x8xf32>
    %32 = arith.subf %28, %31 : vector<8x8xf32>
    %33 = math.exp %32 : vector<8x8xf32>
    %cst_37 = arith.constant dense<0.000000e+00> : vector<8xf32>
    %34 = vector.multi_reduction <add>, %33, %cst_37 [1] : vector<8x8xf32> to vector<8xf32>
    %35 = vector.shape_cast %34 : vector<8xf32> to vector<8x1xf32>
    %36 = vector.broadcast %35 : vector<8x1xf32> to vector<8x8xf32>
    %37 = arith.divf %33, %36 : vector<8x8xf32>
    %cst_38 = arith.constant dense<0.000000e+00> : vector<8x8xf32>
    %38 = tpu.matmul %37, %25, %cst_38 {dimension_numbers = #tpu.dot_dimension_numbers<[1], [0], [0], [1], [0, 0, 1, 1], [], []>} : vector<8x8xf32>, vector<8x8xf32>, vector<8x8xf32> -> vector<8x8xf32>
    %cst_39 = arith.constant dense<0.000000e+00> : vector<8x32xf32>
    %39 = tpu.matmul %38, %27, %cst_39 {dimension_numbers = #tpu.dot_dimension_numbers<[1], [1], [0], [0], [0, 0, 1, 0], [], []>} : vector<8x8xf32>, vector<32x8xf32>, vector<8x32xf32> -> vector<8x32xf32>
    %40 = arith.addf %4, %39 : vector<8x32xf32>
    %c0_40 = arith.constant 0 : index
    %c1_41 = arith.constant 1 : index
    %c0_42 = arith.constant 0 : index
    %c0_43 = arith.constant 0 : index
    %41 = vector.load %arg4[%c0_40, %c1_41, %c0_42, %c0_43] : memref<4x4x32x8xf32, #tpu.memory_space<vmem>>, vector<1x1x32x8xf32>
    %42 = vector.shape_cast %41 : vector<1x1x32x8xf32> to vector<32x8xf32>
    %cst_44 = arith.constant dense<0.000000e+00> : vector<8x8xf32>
    %43 = tpu.matmul %0, %42, %cst_44 {dimension_numbers = #tpu.dot_dimension_numbers<[1], [0], [0], [1], [0, 0, 1, 1], [], []>} : vector<8x32xf32>, vector<32x8xf32>, vector<8x8xf32> -> vector<8x8xf32>
    %c0_45 = arith.constant 0 : index
    %c1_46 = arith.constant 1 : index
    %c0_47 = arith.constant 0 : index
    %c0_48 = arith.constant 0 : index
    %44 = vector.load %arg5[%c0_45, %c1_46, %c0_47, %c0_48] : memref<3x4x1x8xf32, #tpu.memory_space<vmem>>, vector<1x1x1x8xf32>
    %45 = vector.shape_cast %44 : vector<1x1x1x8xf32> to vector<1x8xf32>
    %46 = vector.broadcast %45 : vector<1x8xf32> to vector<8x8xf32>
    %47 = arith.addf %43, %46 : vector<8x8xf32>
    %c1_49 = arith.constant 1 : index
    %c1_50 = arith.constant 1 : index
    %c0_51 = arith.constant 0 : index
    %c0_52 = arith.constant 0 : index
    %48 = vector.load %arg4[%c1_49, %c1_50, %c0_51, %c0_52] : memref<4x4x32x8xf32, #tpu.memory_space<vmem>>, vector<1x1x32x8xf32>
    %49 = vector.shape_cast %48 : vector<1x1x32x8xf32> to vector<32x8xf32>
    %cst_53 = arith.constant dense<0.000000e+00> : vector<8x8xf32>
    %50 = tpu.matmul %1, %49, %cst_53 {dimension_numbers = #tpu.dot_dimension_numbers<[1], [0], [0], [1], [0, 0, 1, 1], [], []>} : vector<8x32xf32>, vector<32x8xf32>, vector<8x8xf32> -> vector<8x8xf32>
    %c1_54 = arith.constant 1 : index
    %c1_55 = arith.constant 1 : index
    %c0_56 = arith.constant 0 : index
    %c0_57 = arith.constant 0 : index
    %51 = vector.load %arg5[%c1_54, %c1_55, %c0_56, %c0_57] : memref<3x4x1x8xf32, #tpu.memory_space<vmem>>, vector<1x1x1x8xf32>
    %52 = vector.shape_cast %51 : vector<1x1x1x8xf32> to vector<1x8xf32>
    %53 = vector.broadcast %52 : vector<1x8xf32> to vector<8x8xf32>
    %54 = arith.addf %50, %53 : vector<8x8xf32>
    %c2_58 = arith.constant 2 : index
    %c1_59 = arith.constant 1 : index
    %c0_60 = arith.constant 0 : index
    %c0_61 = arith.constant 0 : index
    %55 = vector.load %arg4[%c2_58, %c1_59, %c0_60, %c0_61] : memref<4x4x32x8xf32, #tpu.memory_space<vmem>>, vector<1x1x32x8xf32>
    %56 = vector.shape_cast %55 : vector<1x1x32x8xf32> to vector<32x8xf32>
    %cst_62 = arith.constant dense<0.000000e+00> : vector<8x8xf32>
    %57 = tpu.matmul %2, %56, %cst_62 {dimension_numbers = #tpu.dot_dimension_numbers<[1], [0], [0], [1], [0, 0, 1, 1], [], []>} : vector<8x32xf32>, vector<32x8xf32>, vector<8x8xf32> -> vector<8x8xf32>
    %c2_63 = arith.constant 2 : index
    %c1_64 = arith.constant 1 : index
    %c0_65 = arith.constant 0 : index
    %c0_66 = arith.constant 0 : index
    %58 = vector.load %arg5[%c2_63, %c1_64, %c0_65, %c0_66] : memref<3x4x1x8xf32, #tpu.memory_space<vmem>>, vector<1x1x1x8xf32>
    %59 = vector.shape_cast %58 : vector<1x1x1x8xf32> to vector<1x8xf32>
    %60 = vector.broadcast %59 : vector<1x8xf32> to vector<8x8xf32>
    %61 = arith.addf %57, %60 : vector<8x8xf32>
    %c3_67 = arith.constant 3 : index
    %c1_68 = arith.constant 1 : index
    %c0_69 = arith.constant 0 : index
    %c0_70 = arith.constant 0 : index
    %62 = vector.load %arg4[%c3_67, %c1_68, %c0_69, %c0_70] : memref<4x4x32x8xf32, #tpu.memory_space<vmem>>, vector<1x1x32x8xf32>
    %63 = vector.shape_cast %62 : vector<1x1x32x8xf32> to vector<32x8xf32>
    %cst_71 = arith.constant dense<0.000000e+00> : vector<8x8xf32>
    %64 = tpu.matmul %47, %54, %cst_71 {dimension_numbers = #tpu.dot_dimension_numbers<[1], [1], [0], [0], [0, 0, 1, 0], [], []>} : vector<8x8xf32>, vector<8x8xf32>, vector<8x8xf32> -> vector<8x8xf32>
    %cst_72 = arith.constant dense<0xFF800000> : vector<8xf32>
    %65 = vector.multi_reduction <maximumf>, %64, %cst_72 [1] : vector<8x8xf32> to vector<8xf32>
    %66 = vector.shape_cast %65 : vector<8xf32> to vector<8x1xf32>
    %67 = vector.broadcast %66 : vector<8x1xf32> to vector<8x8xf32>
    %68 = arith.subf %64, %67 : vector<8x8xf32>
    %69 = math.exp %68 : vector<8x8xf32>
    %cst_73 = arith.constant dense<0.000000e+00> : vector<8xf32>
    %70 = vector.multi_reduction <add>, %69, %cst_73 [1] : vector<8x8xf32> to vector<8xf32>
    %71 = vector.shape_cast %70 : vector<8xf32> to vector<8x1xf32>
    %72 = vector.broadcast %71 : vector<8x1xf32> to vector<8x8xf32>
    %73 = arith.divf %69, %72 : vector<8x8xf32>
    %cst_74 = arith.constant dense<0.000000e+00> : vector<8x8xf32>
    %74 = tpu.matmul %73, %61, %cst_74 {dimension_numbers = #tpu.dot_dimension_numbers<[1], [0], [0], [1], [0, 0, 1, 1], [], []>} : vector<8x8xf32>, vector<8x8xf32>, vector<8x8xf32> -> vector<8x8xf32>
    %cst_75 = arith.constant dense<0.000000e+00> : vector<8x32xf32>
    %75 = tpu.matmul %74, %63, %cst_75 {dimension_numbers = #tpu.dot_dimension_numbers<[1], [1], [0], [0], [0, 0, 1, 0], [], []>} : vector<8x8xf32>, vector<32x8xf32>, vector<8x32xf32> -> vector<8x32xf32>
    %76 = arith.addf %40, %75 : vector<8x32xf32>
    %c0_76 = arith.constant 0 : index
    %c2_77 = arith.constant 2 : index
    %c0_78 = arith.constant 0 : index
    %c0_79 = arith.constant 0 : index
    %77 = vector.load %arg4[%c0_76, %c2_77, %c0_78, %c0_79] : memref<4x4x32x8xf32, #tpu.memory_space<vmem>>, vector<1x1x32x8xf32>
    %78 = vector.shape_cast %77 : vector<1x1x32x8xf32> to vector<32x8xf32>
    %cst_80 = arith.constant dense<0.000000e+00> : vector<8x8xf32>
    %79 = tpu.matmul %0, %78, %cst_80 {dimension_numbers = #tpu.dot_dimension_numbers<[1], [0], [0], [1], [0, 0, 1, 1], [], []>} : vector<8x32xf32>, vector<32x8xf32>, vector<8x8xf32> -> vector<8x8xf32>
    %c0_81 = arith.constant 0 : index
    %c2_82 = arith.constant 2 : index
    %c0_83 = arith.constant 0 : index
    %c0_84 = arith.constant 0 : index
    %80 = vector.load %arg5[%c0_81, %c2_82, %c0_83, %c0_84] : memref<3x4x1x8xf32, #tpu.memory_space<vmem>>, vector<1x1x1x8xf32>
    %81 = vector.shape_cast %80 : vector<1x1x1x8xf32> to vector<1x8xf32>
    %82 = vector.broadcast %81 : vector<1x8xf32> to vector<8x8xf32>
    %83 = arith.addf %79, %82 : vector<8x8xf32>
    %c1_85 = arith.constant 1 : index
    %c2_86 = arith.constant 2 : index
    %c0_87 = arith.constant 0 : index
    %c0_88 = arith.constant 0 : index
    %84 = vector.load %arg4[%c1_85, %c2_86, %c0_87, %c0_88] : memref<4x4x32x8xf32, #tpu.memory_space<vmem>>, vector<1x1x32x8xf32>
    %85 = vector.shape_cast %84 : vector<1x1x32x8xf32> to vector<32x8xf32>
    %cst_89 = arith.constant dense<0.000000e+00> : vector<8x8xf32>
    %86 = tpu.matmul %1, %85, %cst_89 {dimension_numbers = #tpu.dot_dimension_numbers<[1], [0], [0], [1], [0, 0, 1, 1], [], []>} : vector<8x32xf32>, vector<32x8xf32>, vector<8x8xf32> -> vector<8x8xf32>
    %c1_90 = arith.constant 1 : index
    %c2_91 = arith.constant 2 : index
    %c0_92 = arith.constant 0 : index
    %c0_93 = arith.constant 0 : index
    %87 = vector.load %arg5[%c1_90, %c2_91, %c0_92, %c0_93] : memref<3x4x1x8xf32, #tpu.memory_space<vmem>>, vector<1x1x1x8xf32>
    %88 = vector.shape_cast %87 : vector<1x1x1x8xf32> to vector<1x8xf32>
    %89 = vector.broadcast %88 : vector<1x8xf32> to vector<8x8xf32>
    %90 = arith.addf %86, %89 : vector<8x8xf32>
    %c2_94 = arith.constant 2 : index
    %c2_95 = arith.constant 2 : index
    %c0_96 = arith.constant 0 : index
    %c0_97 = arith.constant 0 : index
    %91 = vector.load %arg4[%c2_94, %c2_95, %c0_96, %c0_97] : memref<4x4x32x8xf32, #tpu.memory_space<vmem>>, vector<1x1x32x8xf32>
    %92 = vector.shape_cast %91 : vector<1x1x32x8xf32> to vector<32x8xf32>
    %cst_98 = arith.constant dense<0.000000e+00> : vector<8x8xf32>
    %93 = tpu.matmul %2, %92, %cst_98 {dimension_numbers = #tpu.dot_dimension_numbers<[1], [0], [0], [1], [0, 0, 1, 1], [], []>} : vector<8x32xf32>, vector<32x8xf32>, vector<8x8xf32> -> vector<8x8xf32>
    %c2_99 = arith.constant 2 : index
    %c2_100 = arith.constant 2 : index
    %c0_101 = arith.constant 0 : index
    %c0_102 = arith.constant 0 : index
    %94 = vector.load %arg5[%c2_99, %c2_100, %c0_101, %c0_102] : memref<3x4x1x8xf32, #tpu.memory_space<vmem>>, vector<1x1x1x8xf32>
    %95 = vector.shape_cast %94 : vector<1x1x1x8xf32> to vector<1x8xf32>
    %96 = vector.broadcast %95 : vector<1x8xf32> to vector<8x8xf32>
    %97 = arith.addf %93, %96 : vector<8x8xf32>
    %c3_103 = arith.constant 3 : index
    %c2_104 = arith.constant 2 : index
    %c0_105 = arith.constant 0 : index
    %c0_106 = arith.constant 0 : index
    %98 = vector.load %arg4[%c3_103, %c2_104, %c0_105, %c0_106] : memref<4x4x32x8xf32, #tpu.memory_space<vmem>>, vector<1x1x32x8xf32>
    %99 = vector.shape_cast %98 : vector<1x1x32x8xf32> to vector<32x8xf32>
    %cst_107 = arith.constant dense<0.000000e+00> : vector<8x8xf32>
    %100 = tpu.matmul %83, %90, %cst_107 {dimension_numbers = #tpu.dot_dimension_numbers<[1], [1], [0], [0], [0, 0, 1, 0], [], []>} : vector<8x8xf32>, vector<8x8xf32>, vector<8x8xf32> -> vector<8x8xf32>
    %cst_108 = arith.constant dense<0xFF800000> : vector<8xf32>
    %101 = vector.multi_reduction <maximumf>, %100, %cst_108 [1] : vector<8x8xf32> to vector<8xf32>
    %102 = vector.shape_cast %101 : vector<8xf32> to vector<8x1xf32>
    %103 = vector.broadcast %102 : vector<8x1xf32> to vector<8x8xf32>
    %104 = arith.subf %100, %103 : vector<8x8xf32>
    %105 = math.exp %104 : vector<8x8xf32>
    %cst_109 = arith.constant dense<0.000000e+00> : vector<8xf32>
    %106 = vector.multi_reduction <add>, %105, %cst_109 [1] : vector<8x8xf32> to vector<8xf32>
    %107 = vector.shape_cast %106 : vector<8xf32> to vector<8x1xf32>
    %108 = vector.broadcast %107 : vector<8x1xf32> to vector<8x8xf32>
    %109 = arith.divf %105, %108 : vector<8x8xf32>
    %cst_110 = arith.constant dense<0.000000e+00> : vector<8x8xf32>
    %110 = tpu.matmul %109, %97, %cst_110 {dimension_numbers = #tpu.dot_dimension_numbers<[1], [0], [0], [1], [0, 0, 1, 1], [], []>} : vector<8x8xf32>, vector<8x8xf32>, vector<8x8xf32> -> vector<8x8xf32>
    %cst_111 = arith.constant dense<0.000000e+00> : vector<8x32xf32>
    %111 = tpu.matmul %110, %99, %cst_111 {dimension_numbers = #tpu.dot_dimension_numbers<[1], [1], [0], [0], [0, 0, 1, 0], [], []>} : vector<8x8xf32>, vector<32x8xf32>, vector<8x32xf32> -> vector<8x32xf32>
    %112 = arith.addf %76, %111 : vector<8x32xf32>
    %c0_112 = arith.constant 0 : index
    %c3_113 = arith.constant 3 : index
    %c0_114 = arith.constant 0 : index
    %c0_115 = arith.constant 0 : index
    %113 = vector.load %arg4[%c0_112, %c3_113, %c0_114, %c0_115] : memref<4x4x32x8xf32, #tpu.memory_space<vmem>>, vector<1x1x32x8xf32>
    %114 = vector.shape_cast %113 : vector<1x1x32x8xf32> to vector<32x8xf32>
    %cst_116 = arith.constant dense<0.000000e+00> : vector<8x8xf32>
    %115 = tpu.matmul %0, %114, %cst_116 {dimension_numbers = #tpu.dot_dimension_numbers<[1], [0], [0], [1], [0, 0, 1, 1], [], []>} : vector<8x32xf32>, vector<32x8xf32>, vector<8x8xf32> -> vector<8x8xf32>
    %c0_117 = arith.constant 0 : index
    %c3_118 = arith.constant 3 : index
    %c0_119 = arith.constant 0 : index
    %c0_120 = arith.constant 0 : index
    %116 = vector.load %arg5[%c0_117, %c3_118, %c0_119, %c0_120] : memref<3x4x1x8xf32, #tpu.memory_space<vmem>>, vector<1x1x1x8xf32>
    %117 = vector.shape_cast %116 : vector<1x1x1x8xf32> to vector<1x8xf32>
    %118 = vector.broadcast %117 : vector<1x8xf32> to vector<8x8xf32>
    %119 = arith.addf %115, %118 : vector<8x8xf32>
    %c1_121 = arith.constant 1 : index
    %c3_122 = arith.constant 3 : index
    %c0_123 = arith.constant 0 : index
    %c0_124 = arith.constant 0 : index
    %120 = vector.load %arg4[%c1_121, %c3_122, %c0_123, %c0_124] : memref<4x4x32x8xf32, #tpu.memory_space<vmem>>, vector<1x1x32x8xf32>
    %121 = vector.shape_cast %120 : vector<1x1x32x8xf32> to vector<32x8xf32>
    %cst_125 = arith.constant dense<0.000000e+00> : vector<8x8xf32>
    %122 = tpu.matmul %1, %121, %cst_125 {dimension_numbers = #tpu.dot_dimension_numbers<[1], [0], [0], [1], [0, 0, 1, 1], [], []>} : vector<8x32xf32>, vector<32x8xf32>, vector<8x8xf32> -> vector<8x8xf32>
    %c1_126 = arith.constant 1 : index
    %c3_127 = arith.constant 3 : index
    %c0_128 = arith.constant 0 : index
    %c0_129 = arith.constant 0 : index
    %123 = vector.load %arg5[%c1_126, %c3_127, %c0_128, %c0_129] : memref<3x4x1x8xf32, #tpu.memory_space<vmem>>, vector<1x1x1x8xf32>
    %124 = vector.shape_cast %123 : vector<1x1x1x8xf32> to vector<1x8xf32>
    %125 = vector.broadcast %124 : vector<1x8xf32> to vector<8x8xf32>
    %126 = arith.addf %122, %125 : vector<8x8xf32>
    %c2_130 = arith.constant 2 : index
    %c3_131 = arith.constant 3 : index
    %c0_132 = arith.constant 0 : index
    %c0_133 = arith.constant 0 : index
    %127 = vector.load %arg4[%c2_130, %c3_131, %c0_132, %c0_133] : memref<4x4x32x8xf32, #tpu.memory_space<vmem>>, vector<1x1x32x8xf32>
    %128 = vector.shape_cast %127 : vector<1x1x32x8xf32> to vector<32x8xf32>
    %cst_134 = arith.constant dense<0.000000e+00> : vector<8x8xf32>
    %129 = tpu.matmul %2, %128, %cst_134 {dimension_numbers = #tpu.dot_dimension_numbers<[1], [0], [0], [1], [0, 0, 1, 1], [], []>} : vector<8x32xf32>, vector<32x8xf32>, vector<8x8xf32> -> vector<8x8xf32>
    %c2_135 = arith.constant 2 : index
    %c3_136 = arith.constant 3 : index
    %c0_137 = arith.constant 0 : index
    %c0_138 = arith.constant 0 : index
    %130 = vector.load %arg5[%c2_135, %c3_136, %c0_137, %c0_138] : memref<3x4x1x8xf32, #tpu.memory_space<vmem>>, vector<1x1x1x8xf32>
    %131 = vector.shape_cast %130 : vector<1x1x1x8xf32> to vector<1x8xf32>
    %132 = vector.broadcast %131 : vector<1x8xf32> to vector<8x8xf32>
    %133 = arith.addf %129, %132 : vector<8x8xf32>
    %c3_139 = arith.constant 3 : index
    %c3_140 = arith.constant 3 : index
    %c0_141 = arith.constant 0 : index
    %c0_142 = arith.constant 0 : index
    %134 = vector.load %arg4[%c3_139, %c3_140, %c0_141, %c0_142] : memref<4x4x32x8xf32, #tpu.memory_space<vmem>>, vector<1x1x32x8xf32>
    %135 = vector.shape_cast %134 : vector<1x1x32x8xf32> to vector<32x8xf32>
    %cst_143 = arith.constant dense<0.000000e+00> : vector<8x8xf32>
    %136 = tpu.matmul %119, %126, %cst_143 {dimension_numbers = #tpu.dot_dimension_numbers<[1], [1], [0], [0], [0, 0, 1, 0], [], []>} : vector<8x8xf32>, vector<8x8xf32>, vector<8x8xf32> -> vector<8x8xf32>
    %cst_144 = arith.constant dense<0xFF800000> : vector<8xf32>
    %137 = vector.multi_reduction <maximumf>, %136, %cst_144 [1] : vector<8x8xf32> to vector<8xf32>
    %138 = vector.shape_cast %137 : vector<8xf32> to vector<8x1xf32>
    %139 = vector.broadcast %138 : vector<8x1xf32> to vector<8x8xf32>
    %140 = arith.subf %136, %139 : vector<8x8xf32>
    %141 = math.exp %140 : vector<8x8xf32>
    %cst_145 = arith.constant dense<0.000000e+00> : vector<8xf32>
    %142 = vector.multi_reduction <add>, %141, %cst_145 [1] : vector<8x8xf32> to vector<8xf32>
    %143 = vector.shape_cast %142 : vector<8xf32> to vector<8x1xf32>
    %144 = vector.broadcast %143 : vector<8x1xf32> to vector<8x8xf32>
    %145 = arith.divf %141, %144 : vector<8x8xf32>
    %cst_146 = arith.constant dense<0.000000e+00> : vector<8x8xf32>
    %146 = tpu.matmul %145, %133, %cst_146 {dimension_numbers = #tpu.dot_dimension_numbers<[1], [0], [0], [1], [0, 0, 1, 1], [], []>} : vector<8x8xf32>, vector<8x8xf32>, vector<8x8xf32> -> vector<8x8xf32>
    %cst_147 = arith.constant dense<0.000000e+00> : vector<8x32xf32>
    %147 = tpu.matmul %146, %135, %cst_147 {dimension_numbers = #tpu.dot_dimension_numbers<[1], [1], [0], [0], [0, 0, 1, 0], [], []>} : vector<8x8xf32>, vector<32x8xf32>, vector<8x32xf32> -> vector<8x32xf32>
    %148 = arith.addf %112, %147 : vector<8x32xf32>
    %149 = vector.broadcast %3 : vector<1x32xf32> to vector<8x32xf32>
    %150 = arith.addf %148, %149 : vector<8x32xf32>
    %c0_148 = arith.constant 0 : index
    %c0_149 = arith.constant 0 : index
    %151 = vector.load %arg7[%c0_148, %c0_149] : memref<8x32xf32, #tpu.memory_space<vmem>>, vector<8x32xf32>
    tpu.vector_store %arg7[%c0_148, %c0_149], %150 {strides = array<i32>} : memref<8x32xf32, #tpu.memory_space<vmem>>, vector<8x32xf32>,
    return
  }
  func.func @transform_0(%arg0: i32) -> (i32, i32) {
    %c0_i32 = arith.constant 0 : i32
    %c0_i32_0 = arith.constant 0 : i32
    return %arg0, %c0_i32 : i32, i32
  }
  func.func @transform_1(%arg0: i32) -> (i32, i32) {
    %c0_i32 = arith.constant 0 : i32
    %c0_i32_0 = arith.constant 0 : i32
    return %arg0, %c0_i32 : i32, i32
  }
  func.func @transform_2(%arg0: i32) -> (i32, i32) {
    %c0_i32 = arith.constant 0 : i32
    %c0_i32_0 = arith.constant 0 : i32
    return %arg0, %c0_i32 : i32, i32
  }
  func.func @transform_3(%arg0: i32) -> (i32, i32, i32, i32) {
    %c0_i32 = arith.constant 0 : i32
    %c0_i32_0 = arith.constant 0 : i32
    %c0_i32_1 = arith.constant 0 : i32
    %c0_i32_2 = arith.constant 0 : i32
    %c0_i32_3 = arith.constant 0 : i32
    return %c0_i32, %c0_i32_0, %c0_i32_1, %c0_i32_2 : i32, i32, i32, i32
  }
  func.func @transform_4(%arg0: i32) -> (i32, i32, i32, i32) {
    %c0_i32 = arith.constant 0 : i32
    %c0_i32_0 = arith.constant 0 : i32
    %c0_i32_1 = arith.constant 0 : i32
    %c0_i32_2 = arith.constant 0 : i32
    %c0_i32_3 = arith.constant 0 : i32
    return %c0_i32, %c0_i32_0, %c0_i32_1, %c0_i32_2 : i32, i32, i32, i32
  }
  func.func @transform_5(%arg0: i32) -> (i32, i32) {
    %c0_i32 = arith.constant 0 : i32
    %c0_i32_0 = arith.constant 0 : i32
    %c0_i32_1 = arith.constant 0 : i32
    return %c0_i32, %c0_i32_0 : i32, i32
  }
  func.func @transform_6(%arg0: i32) -> (i32, i32) {
    %c0_i32 = arith.constant 0 : i32
    %c0_i32_0 = arith.constant 0 : i32
    return %arg0, %c0_i32 : i32, i32
  }
}

</mosaic_0001>

<bundles_post_ra>
// kernel: tpu_custom_call.1
= control target key start
LH: loop header
LB: loop body
LE: loop exit
PB: predicated region body
PF: predicated region fallthrough
CT: control target
= control target key end

     0   :  { %11 = vsyncpa [#allocation3], 0  ;;  %s3627_s0 = inlined_call_operand.vmem [shape: f32[16,32], index: 0, kind: input, shape index: {}]   ;;  %s3628_s1 = inlined_call_operand.vmem [shape: f32[16,32], index: 1, kind: input, shape index: {}]   ;;  %s3629_s2 = inlined_call_operand.vmem [shape: f32[16,32], index: 2, kind: input, shape index: {}]   ;;  %s3630_s3 = inlined_call_operand.vmem [shape: f32[4,4,32,8], index: 3, kind: input, shape index: {}]   ;;  %s3631_s4 = inlined_call_operand.vmem [shape: f32[3,4,1,8], index: 4, kind: input, shape index: {}]   ;;  %s3632_s5 = inlined_call_operand.vmem [shape: f32[1,32], index: 5, kind: input, shape index: {}]   ;;  %s3633_s6 = inlined_call_operand.hbm [shape: f32[16,32], index: 6, kind: output, shape index: {}]  }
   0x1   :  { %13 = vsyncpa [#allocation3 + $0x1], 0  ;;  %s3114_s21 = smov 0   ;;  %s3116_s22 = smov 0  }
   0x2   :  { %s3118_s23 = smov 0   ;;  %s3120_s24 = smov 0  }
   0x3 LB: > { %s3135_s25 = sadd.s32 4294967295, %s3073_s24   ;;  %s2397_s26 = sadd.s32 4294967294, %s3073_s24   ;;  %s3073_s24 = sphi %s3120_s24, %s3641_s24   ;;  %s3069_s23 = sphi %s3118_s23, %s3640_s23   ;;  %s3065_s22 = sphi %s3116_s22, %s3639_s22   ;;  %s3061_s21 = sphi %s3114_s21, %s3638_s21  }
   0x4   : > { %s3139_s27 = sadd.s32 1, %s3073_s24   ;;  %s167_s28 = sadd.s32 1, %s3069_s23 }
   0x5   : > { %s164_s29 = ssub.s32 %s3073_s24, %s3139_s27  ;;  %p177_p0 = scmp.ne.s32.totalorder %s3069_s23, %s3065_s22 }
   0x6   : > { %p165_p1 = scmp.eq.s32.totalorder %s164_s29, 0  ;;  %p178_p2 = scmp.eq.s32.totalorder %s3135_s25, 1 }
   0x7   : > { %p183_p3 = scmp.ne.s32.totalorder %s3065_s22, %s3061_s21  ;;  %p184_p4 = scmp.eq.s32.totalorder %s2397_s26, 1 }
   0x8   : > { %s3150_s30 = scalar_select %p165_p1, %s3069_s23, %s167_s28  }
   0x9   : > { %p3152_p5 = por %p178_p2, %p177_p0  ;;  %p3156_p6 = por %p184_p4, %p183_p3 }
   0xa   : > { %p2400_p7 = scmp.ge.s32.totalorder %s3073_s24, 1  ;;  %p232_p8 = scmp.lt.s32.totalorder %s3073_s24, 3 }
   0xc   : > { %p233_p9 = pnand %p2400_p7, %p232_p8 }
   0xd   : > { %v285_v0 = vld [vmem:[%s3630_s3] sm:$0xff] (!%p233_p9)  ;;  %v286_v1 = vld [vmem:[%s3630_s3 + $0x8] sm:$0xff] (!%p233_p9)  ;;  %v287_v2 = vld [vmem:[%s3630_s3 + $0x10] sm:$0xff] (!%p233_p9)  ;;  %v3075_v3 = vmov (!%p233_p9), 0.0|0.0   ;;  %vm3076_vm0 = vmmov (!%p233_p9), 0   ;;  %v3077_v6 = vmov (!%p233_p9), 0.0  }
   0xe   : > { %236 = sbr.rel (%p233_p9) target bundleno = 3689 (0xe69), region = 44  ;;  %2849 = vmatprep.subr.bf16.mxu1 (!%p233_p9), %v3075_v3  ;;  %v2850_v4 = vpack.c.bf16 (!%p233_p9), %v286_v1, %v285_v0  ;;  %v288_v5 = vld [vmem:[%s3630_s3 + $0x18] sm:$0xff] (!%p233_p9)  ;;  %2641 = vmatprep.mubr.msk.f32.mxu1 (!%p233_p9), %vm3076_vm0, %v3077_v6  ;;  %p269_p10 = scmp.lt.s32.totalorder (!%p233_p9), %s3135_s25, 1  ;;  %v2407_v8 = vld [vmem:[%s3630_s3 + $0x80] sm:$0xff] (!%p233_p9)  ;;  %v2408_v9 = vld [vmem:[%s3630_s3 + $0x88] sm:$0xff] (!%p233_p9)  ;;  %vm296_vm1 = vcmask (!%p233_p9), 261120  }
   0xf   : > { %2861 = vmatprep.subr.bf16.mxu0 (!%p233_p9), %v3075_v3  ;;  %2663 = vmatprep.mubr.msk.f32.mxu0 (!%p233_p9), %vm3076_vm0, %v3077_v6  ;;  %v2853_v7 = vpack.c.bf16 (!%p233_p9), %v288_v5, %v287_v2  ;;  %v2856_v11 = vpack.c.bf16 (!%p233_p9), %v2408_v9, %v2407_v8  ;;  %v2409_v12 = vld [vmem:[%s3630_s3 + $0x90] sm:$0xff] (!%p233_p9)  ;;  %v2410_v13 = vld [vmem:[%s3630_s3 + $0x98] sm:$0xff] (!%p233_p9)  ;;  %v2412_v18 = vld [vmem:[%s3631_s4 + $0x4] ss:$0 sm:$0xff] (!%p233_p9)  ;;  %vm547_vm2 = vcmask (!%p233_p9), 64512   ;;  %s266_s29 = sand.u32 (!%p233_p9), 1, %s3065_s22  }
  0x10   : > { %2851 = vmatpush3.bf16.msra.mxu1 (!%p233_p9), %v2850_v4  ;;  %v2859_v14 = vpack.c.bf16 (!%p233_p9), %v2410_v13, %v2409_v12  ;;  %v2405_v20 = vld [vmem:[%s3631_s4] ss:$0 sm:$0xff] (!%p233_p9)  ;;  %v2415_v25 = vld [vmem:[%s3630_s3 + $0x108] sm:$0xff] (!%p233_p9)  ;;  %v2416_v26 = vld [vmem:[%s3630_s3 + $0x110] sm:$0xff] (!%p233_p9)  ;;  %s2401_s9 = sshll.u32 (!%p233_p9), %s266_s29, 3  ;;  %s2534_s12 = sshll.u32 (!%p233_p9), %s3135_s25, 7 }
  0x11   : > { %2852 = vmatprep.subr.bf16.mxu1 (!%p233_p9), %v3075_v3  ;;  %v2414_v24 = vld [vmem:[%s3630_s3 + $0x100] sm:$0xff] (!%p233_p9)  ;;  %v2417_v28 = vld [vmem:[%s3630_s3 + $0x118] sm:$0xff] (!%p233_p9)  ;;  %v2419_v40 = vld [vmem:[%s3631_s4 + $0x8] ss:$0 sm:$0xff] (!%p233_p9)  ;;  %s268_s13 = scalar_lea.vmem (!%p233_p9), [#allocation2], %s2401_s9 }
  0x12   : > { %v2862_v27 = vpack.c.bf16 (!%p233_p9), %v2415_v25, %v2414_v24  ;;  %v2865_v29 = vpack.c.bf16 (!%p233_p9), %v2417_v28, %v2416_v26  ;;  %v2428_v43 = vld [vmem:[%s3630_s3 + $0x20] sm:$0xff] (!%p233_p9)  ;;  %v2429_v44 = vld [vmem:[%s3630_s3 + $0x28] sm:$0xff] (!%p233_p9)  ;;  %v2430_v46 = vld [vmem:[%s3630_s3 + $0x30] sm:$0xff] (!%p233_p9)  ;;  %s2314_s14 = sshll.u32 (!%p233_p9), %s268_s13, 4  ;;  %s3586_s14 = int_to_ptr.vmem [resolvable:$true] %s2314_s14 }
  0x13   : > { %v2868_v45 = vpack.c.bf16 (!%p233_p9), %v2429_v44, %v2428_v43  ;;  %v2431_v47 = vld [vmem:[%s3630_s3 + $0x38] sm:$0xff] (!%p233_p9)  ;;  %v2435_v50 = vld [vmem:[%s3630_s3 + $0xa0] sm:$0xff] (!%p233_p9)  ;;  %v2436_v51 = vld [vmem:[%s3630_s3 + $0xa8] sm:$0xff] (!%p233_p9) }
  0x14   : > { %2854 = vmatpush3.bf16.msra.mxu1 (!%p233_p9), %v2853_v7  ;;  %2863 = vmatpush3.bf16.msra.mxu0 (!%p233_p9), %v2862_v27  ;;  %v2871_v48 = vpack.c.bf16 (!%p233_p9), %v2431_v47, %v2430_v46  ;;  %v2874_v53 = vpack.c.bf16 (!%p233_p9), %v2436_v51, %v2435_v50  ;;  %v2437_v55 = vld [vmem:[%s3630_s3 + $0xb0] sm:$0xff] (!%p233_p9)  ;;  %v2438_v56 = vld [vmem:[%s3630_s3 + $0xb8] sm:$0xff] (!%p233_p9)  ;;  %v2440_v62 = vld [vmem:[%s3631_s4 + $0x5] ss:$0 sm:$0xff] (!%p233_p9) }
  0x15   : > { %s270_s17 = scalar_select %p269_p10, %s3135_s25, 1  ;;  %2855 = vmatprep.subr.bf16.mxu1 %v3075_v3  ;;  %2864 = vmatprep.subr.bf16.mxu0 %v3075_v3  ;;  %v2877_v57 = vpack.c.bf16 %v2438_v56, %v2437_v55  ;;  %v2433_v63 = vld [vmem:[%s3631_s4 + $0x1] ss:$0 sm:$0xff]  ;;  %v2443_v7 = vld [vmem:[%s3630_s3 + $0x128] sm:$0xff]  ;;  %v2444_v8 = vld [vmem:[%s3630_s3 + $0x130] sm:$0xff] }
  0x16   : > { %v2442_v5 = vld [vmem:[%s3630_s3 + $0x120] sm:$0xff]  ;;  %v2450_v27 = vld [vmem:[%s3630_s3 + $0x1a8] sm:$0xff]  ;;  %vm3345_vm3 = vmpackc.low %vm547_vm2, %vm547_vm2  ;;  %s3078_s25 = smov [#allocation2]  }
  0x17   : > { %s3189_s28 = sshll.u32 %s270_s17, 3  ;;  %v2880_v9 = vpack.c.bf16 %v2443_v7, %v2442_v5  ;;  %v2449_v26 = vld [vmem:[%s3630_s3 + $0x1a0] sm:$0xff]  ;;  %v2474_v44 = vld [vmem:[%s3630_s3 + $0xc8] sm:$0xff]  ;;  %v2475_v46 = vld [vmem:[%s3630_s3 + $0xd0] sm:$0xff]  ;;  %s3015_s19 = sshll.u32 %s3078_s25, 4  ;;  %s3016_s19 = int_to_ptr.vmem [resolvable:$false] %s3015_s19 }
  0x18   : > { %s272_s10 = scalar_lea.vmem %s3627_s0, %s3189_s28  ;;  %s276_s17 = scalar_lea.vmem %s3628_s1, %s3189_s28  ;;  %2866 = vmatpush3.bf16.msra.mxu0 %v2865_v29  ;;  %v2886_v28 = vpack.c.bf16 %v2450_v27, %v2449_v26  ;;  %v2473_v43 = vld [vmem:[%s3630_s3 + $0xc0] sm:$0xff]  ;;  %v2476_v47 = vld [vmem:[%s3630_s3 + $0xd8] sm:$0xff]  ;;  %v2467_v50 = vld [vmem:[%s3630_s3 + $0x48] sm:$0xff] }
  0x19   : > { %v3195_v10 = vld [vmem:[%s272_s10] sm:$0xff]  ;;  %s280_s18 = scalar_lea.vmem %s3629_s2, %s3189_s28  ;;  %2867 = vmatprep.subr.bf16.mxu0 %v3075_v3  ;;  %s3011_s28 = scalar_lea.vmem %s3586_s14, 128 }
  0x1a   : > { %2642 = vmatmul.mubr.msk.f32.vlgmr.msra.gmra.mrb[0].mxu1 %vm296_vm1, %v3195_v10  ;;  %v3213_v15 = vld [vmem:[%s276_s17] sm:$0xff]  ;;  %s3584_s17 = scalar_lea.hbm %s3633_s6, %s2534_s12  ;;  %p3012_p11 = scmp.ne.s32.totalorder %s3586_s14, %s3011_s28 }
  0x1b   : > { %2857 = vmatpush3.bf16.msra.mxu1 %v2856_v11  ;;  %2652 = vmatprep.mubr.msk.f32.mxu1 %vm3076_vm0, %v3077_v6  ;;  %v3248_v30 = vld [vmem:[%s280_s18] sm:$0xff]  ;;  %v2445_v11 = vld [vmem:[%s3630_s3 + $0x138] sm:$0xff]  ;;  %s2301_s18 = scalar_lea.sflag [#allocation3], %s266_s29  ;;  %s3017_s20 = scalar_lea.vmem %s3016_s19, 256 }
  0x1c   : > { %2858 = vmatprep.subr.bf16.mxu1 %v3075_v3  ;;  %2664 = vmatmul.mubr.msk.f32.vlgmr.msra.gmra.mrb[0].mxu0 %vm296_vm1, %v3248_v30  ;;  %v2883_v12 = vpack.c.bf16 %v2445_v11, %v2444_v8  ;;  %v2480_v8 = vld [vmem:[%s3630_s3 + $0x140] sm:$0xff]  ;;  %v2482_v11 = vld [vmem:[%s3630_s3 + $0x150] sm:$0xff]  ;;  %p3013_p12 = pnand %p3012_p11, %p3152_p5  ;;  %p3018_p0 = scmp.lt.s32.totalorder %s3586_s14, %s3016_s19 }
  0x1d   : > { %2684 = vmatprep.mubr.msk.f32.mxu0 %vm3076_vm0, %v3077_v6  ;;  %2869 = vmatpush3.bf16.msra.mxu0 %v2868_v45  ;;  %v2908_v45 = vpack.c.bf16 %v2474_v44, %v2473_v43  ;;  %v2502_v43 = vld [vmem:[%s3630_s3 + $0x78] sm:$0xff]  ;;  %p3019_p1 = scmp.lt.s32.totalorder %s3017_s20, %s3011_s28 }
  0x1e   : > { %2870 = vmatprep.subr.bf16.mxu0 %v3075_v3  ;;  %p3014_p13 = pneg %p3013_p12 }
  0x1f   : > { %2860 = vmatpush3.bf16.msra.mxu1 %v2859_v14  ;;  %p3020_p2 = por %p3019_p1, %p3018_p0 }
  0x20   : > { %2666 = vmatprep.subr.mxu1 %v3077_v6 }
  0x21   : > { %2872 = vmatpush3.bf16.msra.mxu0 %v2871_v48  ;;  %v2911_v48 = vpack.c.bf16 %v2476_v47, %v2475_v46  ;;  %v2507_v46 = vld [vmem:[%s3630_s3 + $0xe8] sm:$0xff]  ;;  %p3021_p3 = pnand %p3020_p2, %p3014_p13 }
  0x22   : > { %2653 = vmatmul.mubr.msk.f32.vlgmr.msra.gmra.mrb[2].mxu1 %vm296_vm1, %v3213_v15  ;;  %2879 = vmatprep.subr.bf16.mxu0 %v3075_v3 }
  0x23   : > { %2668 = vmatprep.mubr.msk.f32.mxu1 %vm3076_vm0, %v3077_v6 }
  0x24   : > { %2685 = vmatmul.mubr.msk.f32.vlgmr.msra.gmra.mrb[2].mxu0 %vm296_vm1, %v3195_v10 }
  0x25   : > { %2706 = vmatprep.mubr.msk.f32.mxu0 %vm3076_vm0, %v3077_v6  ;;  %2881 = vmatpush3.bf16.msra.mxu0 %v2880_v9  ;;  %v2481_v9 = vld [vmem:[%s3630_s3 + $0x148] sm:$0xff] }
  0x26   : > { %2882 = vmatprep.subr.bf16.mxu0 %v3075_v3 }
  0x29   : > { %2884 = vmatpush3.bf16.msra.mxu0 %v2883_v12  ;;  %v2914_v12 = vpack.c.bf16 %v2481_v9, %v2480_v8 }
  0x2a   : > { %2885 = vmatprep.subr.bf16.mxu0 %v3075_v3 }
  0x2c   : > { %2707 = vmatmul.mubr.msk.f32.vlgmr.msra.gmra.mrb[4].mxu0 %vm296_vm1, %v3248_v30 }
  0x2d   : > { %2727 = vmatprep.mubr.msk.f32.mxu0 %vm3076_vm0, %v3077_v6 }
  0x32   : > { %2888 = vmatpush3.bf16.xpose.msk.msra.mxu0 %vm3345_vm3, %v2886_v28  ;;  %v2487_v28 = vld [vmem:[%s3630_s3 + $0x1c0] sm:$0xff] }
  0x33   : > { %2889 = vmatprep.subr.bf16.mxu0 %v3075_v3 }
  0xed   : > { %v366_v16 = vpop.f32.mrb[0].mxu1 }
  0xee   : > { %v2643_v17 = vpop.f32.mrb[1].mxu1  ;;  %v367_v23 = vadd.f32 %v2405_v20, %v366_v16 }
  0xef   : > { %v538_v39 = vpop.f32.mrb[0].mxu0 }
  0xf0   : > { %v2665_v41 = vpop.f32.mrb[1].mxu0  ;;  %v539_v42 = vadd.f32 %v2419_v40, %v538_v39  ;;  %v2423_v40 = vld [vmem:[%s3630_s3 + $0x190] sm:$0xff] }
  0xf1   : > { %v2424_v41 = vld [vmem:[%s3630_s3 + $0x198] sm:$0xff] }
  0xf5   : > { %v452_v19 = vpop.f32.mrb[2].mxu1 }
  0xf6   : > { %v453_v21 = vadd.f32 %v2412_v18, %v452_v19  ;;  %v2654_v22 = vpop.f32.mrb[3].mxu1 }
  0xf7   : > { %v787_v58 = vpop.f32.mrb[2].mxu0  ;;  %v2447_v22 = vld [vmem:[%s3631_s4 + $0x9] ss:$0 sm:$0xff] }
  0xf8   : > { %2667 = vmatpush3.xpose.msk.msra.mxu1 %vm547_vm2, %v453_v21  ;;  %v2686_v59 = vpop.f32.mrb[3].mxu0  ;;  %v788_v4 = vadd.f32 %v2433_v63, %v787_v58 }
  0xf9   : > { %2671 = vmatprep.subr.mxu1 %v3077_v6  ;;  %v2478_v59 = vld [vmem:[%s3631_s4 + $0x6] ss:$0 sm:$0xff] }
  0xfb   : > { %2669 = vmatmul.mubr.msk.f32.vlgmr.msra.gmra.mrb[4].mxu1 %vm547_vm2, %v367_v23 }
  0xfc   : > { %2673 = vmatprep.mubr.msk.f32.mxu1 %vm3076_vm0, %v3077_v6  ;;  %2672 = vmatpush3.msra.mxu1 %v539_v42  ;;  %v2898_v42 = vpack.c.bf16 %v2424_v41, %v2423_v40 }
  0xfd   : > { %2873 = vmatprep.subr.bf16.mxu1 %v3075_v3 }
  0xff   : > { %v953_v23 = vpop.f32.mrb[4].mxu0 }
 0x100   : > { %v954_v24 = vadd.f32 %v2447_v22, %v953_v23  ;;  %v2708_v25 = vpop.f32.mrb[5].mxu0 }
 0x101   : > { %v2485_v25 = vld [vmem:[%s3631_s4 + $0xa] ss:$0 sm:$0xff] }
 0x1ce   : > { %v620_v31 = vpop.f32.mrb[4].mxu1 }
 0x1cf   : > { %v2670_v32 = vpop.f32.mrb[5].mxu1  ;;  %v624_v33 = vsel %vm547_vm2, %v620_v31, -inf }
 0x1d0   : > { %625 = vmax.xlane.f32.xlu0 %v624_v33  ;;  %v2452_v32 = vld [vmem:[%s3630_s3 + $0x1b8] sm:$0xff] }
 0x25d   : > { %v626_v34 = vpop.xlane.xlu0 %625 }
 0x25e   : > { %v627_v35 = vsub.f32 %v620_v31, %v626_v34  ;;  %v2451_v31 = vld [vmem:[%s3630_s3 + $0x1b0] sm:$0xff] }
 0x25f   : > { %v2890_v33 = vpack.c.bf16 %v2452_v32, %v2451_v31  ;;  %v2488_v31 = vld [vmem:[%s3630_s3 + $0x1c8] sm:$0xff] }
 0x260   : > { %v628_v36 = vmul.f32 1.442695, %v627_v35  ;;  %v2421_v35 = vld [vmem:[%s3630_s3 + $0x180] sm:$0xff]  ;;  %v2920_v32 = vpack.c.bf16 %v2488_v31, %v2487_v28 }
 0x261   : > { %2892 = vmatpush3.bf16.xpose.msk.msra.mxu0 %vm3345_vm3, %v2890_v33  ;;  %v2489_v33 = vld [vmem:[%s3630_s3 + $0x1d0] sm:$0xff]  ;;  %v2532_v28 = vld [vmem:[%s3632_s5] ss:$0 sm:$0xff] }
 0x262   : > { %2995 = vpow2.f32 %v628_v36  ;;  %2901 = vmatprep.subr.bf16.mxu0 %v3075_v3  ;;  %v2422_v36 = vld [vmem:[%s3630_s3 + $0x188] sm:$0xff] }
 0x26c   : > { %v2996_v37 = vpop.eup %2995 }
 0x26d   : > { %v630_v38 = vsel %vm547_vm2, %v2996_v37, 0.0 }
 0x26e   : > { %631 = vadd.xlane.f32.xlu0 %v630_v38  ;;  %v2894_v38 = vpack.c.bf16 %v2422_v36, %v2421_v35 }
 0x2fb   : > { %v632_v49 = vpop.xlane.xlu0 %631 }
 0x2fc   : > { %2997 = vrcp.f32 %v632_v49  ;;  %v2466_v49 = vld [vmem:[%s3630_s3 + $0x40] sm:$0xff] }
 0x2fd   : > { %v2902_v51 = vpack.c.bf16 %v2467_v50, %v2466_v49  ;;  %v2509_v49 = vld [vmem:[%s3630_s3 + $0xf8] sm:$0xff] }
 0x306   : > { %v2998_v52 = vpop.eup %2997 }
 0x307   : > { %v634_v54 = vmul.f32 %v2998_v52, %v2996_v37  ;;  %v2468_v52 = vld [vmem:[%s3630_s3 + $0x50] sm:$0xff] }
 0x309   : > { %2674 = vmatmul.mubr.msk.f32.vlgmr.msra.gmra.mrb[6].mxu1 %vm547_vm2, %v634_v54 }
 0x30a   : > { %2875 = vmatpush3.bf16.msra.mxu1 %v2874_v53  ;;  %2695 = vmatprep.mubr.msk.f32.mxu1 %vm3076_vm0, %v3077_v6  ;;  %v2469_v53 = vld [vmem:[%s3630_s3 + $0x58] sm:$0xff] }
 0x30b   : > { %2876 = vmatprep.subr.bf16.mxu1 %v3075_v3  ;;  %v2905_v56 = vpack.c.bf16 %v2469_v53, %v2468_v52 }
 0x30e   : > { %2878 = vmatpush3.bf16.msra.mxu1 %v2877_v57 }
 0x30f   : > { %2709 = vmatprep.subr.mxu1 %v3077_v6 }
 0x311   : > { %2696 = vmatmul.mubr.msk.f32.vlgmr.msra.gmra.mrb[8].mxu1 %vm296_vm1, %v3213_v15 }
 0x312   : > { %2711 = vmatprep.mubr.msk.f32.mxu1 %vm3076_vm0, %v3077_v6 }
 0x3dc   : > { %v3300_v60 = vpop.f32.mrb[6].mxu1 }
 0x3dd   : > { %v2675_v61 = vpop.f32.mrb[7].mxu1 }
 0x3e4   : > { %v870_v0 = vpop.f32.mrb[8].mxu1 }
 0x3e5   : > { %v871_v1 = vadd.f32 %v2440_v62, %v870_v0  ;;  %v2697_v2 = vpop.f32.mrb[9].mxu1 }
 0x3e6   : > { %v2471_v2 = vld [vmem:[%s3631_s4 + $0x2] ss:$0 sm:$0xff] }
 0x3e7   : > { %2710 = vmatpush3.xpose.msk.msra.mxu1 %vm547_vm2, %v871_v1 }
 0x3e8   : > { %2714 = vmatprep.subr.mxu1 %v3077_v6 }
 0x3ea   : > { %2712 = vmatmul.mubr.msk.f32.vlgmr.msra.gmra.mrb[10].mxu1 %vm547_vm2, %v788_v4 }
 0x3eb   : > { %2716 = vmatprep.mubr.msk.f32.mxu1 %vm3076_vm0, %v3077_v6  ;;  %2715 = vmatpush3.msra.mxu1 %v954_v24 }
 0x3ec   : > { %2893 = vmatprep.subr.bf16.mxu1 %v3075_v3 }
 0x4bd   : > { %v1034_v13 = vpop.f32.mrb[10].mxu1 }
 0x4be   : > { %v2713_v14 = vpop.f32.mrb[11].mxu1  ;;  %v1038_v16 = vsel %vm547_vm2, %v1034_v13, -inf }
 0x4bf   : > { %1039 = vmax.xlane.f32.xlu1 %v1038_v16 }
 0x54c   : > { %v1040_v17 = vpop.xlane.xlu1 %1039 }
 0x54d   : > { %v1041_v18 = vsub.f32 %v1034_v13, %v1040_v17  ;;  %v2483_v13 = vld [vmem:[%s3630_s3 + $0x158] sm:$0xff] }
 0x54e   : > { %v2917_v14 = vpack.c.bf16 %v2483_v13, %v2482_v11 }
 0x54f   : > { %v1042_v19 = vmul.f32 1.442695, %v1041_v18 }
 0x551   : > { %2999 = vpow2.f32 %v1042_v19 }
 0x55b   : > { %v3000_v20 = vpop.eup %2999 }
 0x55c   : > { %v1044_v21 = vsel %vm547_vm2, %v3000_v20, 0.0 }
 0x55d   : > { %1045 = vadd.xlane.f32.xlu1 %v1044_v21 }
 0x5ea   : > { %v1046_v34 = vpop.xlane.xlu1 %1045 }
 0x5eb   : > { %3001 = vrcp.f32 %v1046_v34  ;;  %v2490_v34 = vld [vmem:[%s3630_s3 + $0x1d8] sm:$0xff] }
 0x5ec   : > { %v2924_v35 = vpack.c.bf16 %v2490_v34, %v2489_v33 }
 0x5f5   : > { %v3002_v37 = vpop.eup %3001 }
 0x5f6   : > { %v1048_v39 = vmul.f32 %v3002_v37, %v3000_v20  ;;  %v2499_v37 = vld [vmem:[%s3630_s3 + $0x60] sm:$0xff] }
 0x5f8   : > { %2717 = vmatmul.mubr.msk.f32.vlgmr.msra.gmra.mrb[12].mxu1 %vm547_vm2, %v1048_v39 }
 0x5f9   : > { %2896 = vmatpush3.bf16.xpose.msk.msra.mxu1 %vm3345_vm3, %v2894_v38  ;;  %2738 = vmatprep.mubr.msk.f32.mxu1 %vm3076_vm0, %v3077_v6  ;;  %v2500_v38 = vld [vmem:[%s3630_s3 + $0x68] sm:$0xff] }
 0x5fa   : > { %2897 = vmatprep.subr.bf16.mxu1 %v3075_v3  ;;  %v2928_v40 = vpack.c.bf16 %v2500_v38, %v2499_v37 }
 0x601   : > { %2900 = vmatpush3.bf16.xpose.msk.msra.mxu1 %vm3345_vm3, %v2898_v42  ;;  %v2501_v42 = vld [vmem:[%s3630_s3 + $0x70] sm:$0xff] }
 0x602   : > { %2907 = vmatprep.subr.bf16.mxu1 %v3075_v3  ;;  %v2931_v44 = vpack.c.bf16 %v2502_v43, %v2501_v42 }
 0x608   : > { %2739 = vmatmul.mubr.msk.f32.vlgmr.msra.gmra.mrb[14].mxu1 %vm547_vm2, %v3300_v60 }
 0x609   : > { %2909 = vmatpush3.bf16.msra.mxu1 %v2908_v45  ;;  %2760 = vmatprep.mubr.msk.f32.mxu1 %vm3076_vm0, %v3077_v6  ;;  %v2506_v45 = vld [vmem:[%s3630_s3 + $0xe0] sm:$0xff] }
 0x60a   : > { %2910 = vmatprep.subr.bf16.mxu1 %v3075_v3  ;;  %v2934_v47 = vpack.c.bf16 %v2507_v46, %v2506_v45 }
 0x60d   : > { %2912 = vmatpush3.bf16.msra.mxu1 %v2911_v48  ;;  %v2508_v48 = vld [vmem:[%s3630_s3 + $0xf0] sm:$0xff] }
 0x60e   : > { %2774 = vmatprep.subr.mxu1 %v3077_v6  ;;  %v2937_v50 = vpack.c.bf16 %v2509_v49, %v2508_v48 }
 0x610   : > { %2761 = vmatmul.mubr.msk.f32.vlgmr.msra.gmra.mrb[16].mxu1 %vm296_vm1, %v3213_v15 }
 0x611   : > { %2776 = vmatprep.mubr.msk.f32.mxu1 %vm3076_vm0, %v3077_v6 }
 0x6cb   : > { %v1118_v54 = vpop.f32.mrb[12].mxu1 }
 0x6cc   : > { %v2718_v55 = vpop.f32.mrb[13].mxu1  ;;  %2728 = vmatmul.mubr.msk.f32.vlgmr.msra.gmra.mrb[6].mxu0 %vm547_vm2, %v1118_v54  ;;  %v2511_v54 = vld [vmem:[%s3631_s4 + $0x7] ss:$0 sm:$0xff] }
 0x6cd   : > { %2903 = vmatpush3.bf16.msra.mxu0 %v2902_v51  ;;  %2749 = vmatprep.mubr.msk.f32.mxu0 %vm3076_vm0, %v3077_v6 }
 0x6ce   : > { %2904 = vmatprep.subr.bf16.mxu0 %v3075_v3 }
 0x6d1   : > { %2906 = vmatpush3.bf16.msra.mxu0 %v2905_v56 }
 0x6d2   : > { %2913 = vmatprep.subr.bf16.mxu0 %v3075_v3 }
 0x6d4   : > { %2750 = vmatmul.mubr.msk.f32.vlgmr.msra.gmra.mrb[8].mxu0 %vm296_vm1, %v3195_v10 }
 0x6d5   : > { %2771 = vmatprep.mubr.msk.f32.mxu0 %vm3076_vm0, %v3077_v6  ;;  %2915 = vmatpush3.bf16.msra.mxu0 %v2914_v12 }
 0x6d6   : > { %2916 = vmatprep.subr.bf16.mxu0 %v3075_v3 }
 0x6d9   : > { %2918 = vmatpush3.bf16.msra.mxu0 %v2917_v14 }
 0x6da   : > { %2919 = vmatprep.subr.bf16.mxu0 %v3075_v3 }
 0x6db   : > { %v1288_v57 = vpop.f32.mrb[14].mxu1 }
 0x6dc   : > { %v2740_v58 = vpop.f32.mrb[15].mxu1  ;;  %2772 = vmatmul.mubr.msk.f32.vlgmr.msra.gmra.mrb[10].mxu0 %vm296_vm1, %v3248_v30 }
 0x6dd   : > { %2792 = vmatprep.mubr.msk.f32.mxu0 %vm3076_vm0, %v3077_v6 }
 0x6e2   : > { %2922 = vmatpush3.bf16.xpose.msk.msra.mxu0 %vm3345_vm3, %v2920_v32 }
 0x6e3   : > { %v1454_v60 = vpop.f32.mrb[16].mxu1  ;;  %2923 = vmatprep.subr.bf16.mxu0 %v3075_v3 }
 0x6e4   : > { %v1455_v61 = vadd.f32 %v2478_v59, %v1454_v60  ;;  %v2762_v62 = vpop.f32.mrb[17].mxu1  ;;  %v2513_v59 = vld [vmem:[%s3630_s3 + $0x160] sm:$0xff]  ;;  %v2514_v60 = vld [vmem:[%s3630_s3 + $0x168] sm:$0xff] }
 0x6e5   : > { %v2940_v62 = vpack.c.bf16 %v2514_v60, %v2513_v59 }
 0x6e6   : > { %2775 = vmatpush3.xpose.msk.msra.mxu1 %vm547_vm2, %v1455_v61  ;;  %v2515_v61 = vld [vmem:[%s3630_s3 + $0x170] sm:$0xff] }
 0x6e7   : > { %2779 = vmatprep.subr.mxu1 %v3077_v6 }
 0x6ea   : > { %2926 = vmatpush3.bf16.xpose.msk.msra.mxu0 %vm3345_vm3, %v2924_v35 }
 0x6eb   : > { %2939 = vmatprep.subr.bf16.mxu0 %v3075_v3 }
 0x79f   : > { %v1203_v63 = vpop.f32.mrb[6].mxu0 }
 0x7a0   : > { %v3430_v0 = vadd.f32 %v1288_v57, %v1203_v63  ;;  %v2729_v1 = vpop.f32.mrb[7].mxu0  ;;  %v2516_v63 = vld [vmem:[%s3630_s3 + $0x178] sm:$0xff] }
 0x7a1   : > { %v2943_v1 = vpack.c.bf16 %v2516_v63, %v2515_v61 }
 0x7a7   : > { %v1371_v4 = vpop.f32.mrb[8].mxu0 }
 0x7a8   : > { %v1372_v5 = vadd.f32 %v2471_v2, %v1371_v4  ;;  %v2751_v7 = vpop.f32.mrb[9].mxu0 }
 0x7aa   : > { %2777 = vmatmul.mubr.msk.f32.vlgmr.msra.gmra.mrb[18].mxu1 %vm547_vm2, %v1372_v5 }
 0x7ab   : > { %2781 = vmatprep.mubr.msk.f32.mxu1 %vm3076_vm0, %v3077_v6 }
 0x7af   : > { %v1537_v24 = vpop.f32.mrb[10].mxu0 }
 0x7b0   : > { %v2773_v26 = vpop.f32.mrb[11].mxu0  ;;  %v1538_v27 = vadd.f32 %v2485_v25, %v1537_v24 }
 0x7b2   : > { %2780 = vmatpush3.msra.mxu1 %v1538_v27 }
 0x7b3   : > { %2927 = vmatprep.subr.bf16.mxu1 %v3075_v3 }
 0x87d   : > { %v1618_v16 = vpop.f32.mrb[18].mxu1 }
 0x87e   : > { %v2778_v17 = vpop.f32.mrb[19].mxu1  ;;  %v1622_v18 = vsel %vm547_vm2, %v1618_v16, -inf }
 0x87f   : > { %1623 = vmax.xlane.f32.xlu0 %v1622_v18  ;;  %v2520_v18 = vld [vmem:[%s3630_s3 + $0x1e0] sm:$0xff] }
 0x90c   : > { %v1624_v19 = vpop.xlane.xlu0 %1623 }
 0x90d   : > { %v1625_v20 = vsub.f32 %v1618_v16, %v1624_v19  ;;  %v2521_v19 = vld [vmem:[%s3630_s3 + $0x1e8] sm:$0xff] }
 0x90f   : > { %v1626_v21 = vmul.f32 1.442695, %v1625_v20  ;;  %v2946_v20 = vpack.c.bf16 %v2521_v19, %v2520_v18 }
 0x911   : > { %3003 = vpow2.f32 %v1626_v21  ;;  %v2522_v21 = vld [vmem:[%s3630_s3 + $0x1f0] sm:$0xff] }
 0x91b   : > { %v3004_v22 = vpop.eup %3003 }
 0x91c   : > { %v1628_v23 = vsel %vm547_vm2, %v3004_v22, 0.0 }
 0x91d   : > { %1629 = vadd.xlane.f32.xlu1 %v1628_v23 }
 0x9aa   : > { %v1630_v36 = vpop.xlane.xlu1 %1629 }
 0x9ab   : > { %3005 = vrcp.f32 %v1630_v36 }
 0x9b5   : > { %v3006_v39 = vpop.eup %3005 }
 0x9b6   : > { %v1632_v41 = vmul.f32 %v3006_v39, %v3004_v22  ;;  %v2523_v22 = vld [vmem:[%s3630_s3 + $0x1f8] sm:$0xff] }
 0x9b7   : > { %v2950_v23 = vpack.c.bf16 %v2523_v22, %v2522_v21 }
 0x9b8   : > { %2782 = vmatmul.mubr.msk.f32.vlgmr.msra.gmra.mrb[20].mxu1 %vm547_vm2, %v1632_v41 }
 0x9b9   : > { %2929 = vmatpush3.bf16.msra.mxu1 %v2928_v40  ;;  %2803 = vmatprep.mubr.msk.f32.mxu1 %vm3076_vm0, %v3077_v6 }
 0x9ba   : > { %2930 = vmatprep.subr.bf16.mxu1 %v3075_v3 }
 0x9bd   : > { %2932 = vmatpush3.bf16.msra.mxu1 %v2931_v44 }
 0x9be   : > { %2933 = vmatprep.subr.bf16.mxu1 %v3075_v3 }
 0x9c0   : > { %2804 = vmatmul.mubr.msk.f32.vlgmr.msra.gmra.mrb[22].mxu1 %vm296_vm1, %v3195_v10 }
 0x9c1   : > { %2935 = vmatpush3.bf16.msra.mxu1 %v2934_v47  ;;  %2814 = vmatprep.mubr.msk.f32.mxu1 %vm3076_vm0, %v3077_v6 }
 0x9c2   : > { %2936 = vmatprep.subr.bf16.mxu1 %v3075_v3 }
 0x9c5   : > { %2938 = vmatpush3.bf16.msra.mxu1 %v2937_v50 }
 0x9c6   : > { %2828 = vmatprep.subr.mxu1 %v3077_v6 }
 0x9c8   : > { %2815 = vmatmul.mubr.msk.f32.vlgmr.msra.gmra.mrb[24].mxu1 %vm296_vm1, %v3213_v15  ;;  %v2504_v15 = vld [vmem:[%s3631_s4 + $0x3] ss:$0 sm:$0xff] }
 0x9c9   : > { %2830 = vmatprep.mubr.msk.f32.mxu1 %vm3076_vm0, %v3077_v6 }
 0xa8b   : > { %v1702_v51 = vpop.f32.mrb[20].mxu1 }
 0xa8c   : > { %v2783_v52 = vpop.f32.mrb[21].mxu1  ;;  %2793 = vmatmul.mubr.msk.f32.vlgmr.msra.gmra.mrb[12].mxu0 %vm547_vm2, %v1702_v51 }
 0xa8d   : > { %2825 = vmatprep.mubr.msk.f32.mxu0 %vm3076_vm0, %v3077_v6  ;;  %2941 = vmatpush3.bf16.msra.mxu0 %v2940_v62 }
 0xa8e   : > { %2942 = vmatprep.subr.bf16.mxu0 %v3075_v3 }
 0xa91   : > { %2944 = vmatpush3.bf16.msra.mxu0 %v2943_v1 }
 0xa92   : > { %2945 = vmatprep.subr.bf16.mxu0 %v3075_v3 }
 0xa93   : > { %v1871_v10 = vpop.f32.mrb[22].mxu1 }
 0xa94   : > { %v2805_v53 = vpop.f32.mrb[23].mxu1  ;;  %v1872_v58 = vadd.f32 %v2504_v15, %v1871_v10  ;;  %2826 = vmatmul.mubr.msk.f32.vlgmr.msra.gmra.mrb[14].mxu0 %vm296_vm1, %v3248_v30 }
 0xa95   : > { %2846 = vmatprep.mubr.msk.f32.mxu0 %vm3076_vm0, %v3077_v6 }
 0xa9a   : > { %2948 = vmatpush3.bf16.xpose.msk.msra.mxu0 %vm3345_vm3, %v2946_v20 }
 0xa9b   : > { %v1954_v55 = vpop.f32.mrb[24].mxu1  ;;  %2949 = vmatprep.subr.bf16.mxu0 %v3075_v3 }
 0xa9c   : > { %v1955_v56 = vadd.f32 %v2511_v54, %v1954_v55  ;;  %v2816_v57 = vpop.f32.mrb[25].mxu1 }
 0xa9e   : > { %2829 = vmatpush3.xpose.msk.msra.mxu1 %vm547_vm2, %v1955_v56 }
 0xa9f   : > { %2833 = vmatprep.subr.mxu1 %v3077_v6 }
 0xaa1   : > { %2831 = vmatmul.mubr.msk.f32.vlgmr.msra.gmra.mrb[26].mxu1 %vm547_vm2, %v1872_v58 }
 0xaa2   : > { %2835 = vmatprep.mubr.msk.f32.mxu1 %vm3076_vm0, %v3077_v6  ;;  %v2518_v6 = vld [vmem:[%s3631_s4 + $0xb] ss:$0 sm:$0xff]  ;;  %2952 = vmatpush3.bf16.xpose.msk.msra.mxu0 %vm3345_vm3, %v2950_v23 }
 0xb5f   : > { %v1787_v2 = vpop.f32.mrb[12].mxu0 }
 0xb60   : > { %v1791_v4 = vadd.f32 %v1787_v2, %v3430_v0  ;;  %v2794_v5 = vpop.f32.mrb[13].mxu0 }
 0xb67   : > { %v2037_v30 = vpop.f32.mrb[14].mxu0 }
 0xb68   : > { %v2827_v0 = vpop.f32.mrb[15].mxu0  ;;  %v2038_v17 = vadd.f32 %v2518_v6, %v2037_v30 }
 0xb6a   : > { %2834 = vmatpush3.msra.mxu1 %v2038_v17 }
 0xb74   : > { %v2118_v7 = vpop.f32.mrb[26].mxu1 }
 0xb75   : > { %v2832_v8 = vpop.f32.mrb[27].mxu1  ;;  %v2122_v9 = vsel %vm547_vm2, %v2118_v7, -inf }
 0xb76   : > { %2123 = vmax.xlane.f32.xlu0 %v2122_v9 }
 0xc03   : > { %v2124_v11 = vpop.xlane.xlu0 %2123 }
 0xc04   : > { %v2125_v12 = vsub.f32 %v2118_v7, %v2124_v11 }
 0xc06   : > { %v2126_v13 = vmul.f32 1.442695, %v2125_v12 }
 0xc08   : > { %3007 = vpow2.f32 %v2126_v13 }
 0xc12   : > { %v3008_v14 = vpop.eup %3007 }
 0xc13   : > { %v2128_v16 = vsel %vm547_vm2, %v3008_v14, 0.0 }
 0xc14   : > { %2129 = vadd.xlane.f32.xlu1 %v2128_v16 }
 0xca1   : > { %v2130_v24 = vpop.xlane.xlu1 %2129 }
 0xca2   : > { %3009 = vrcp.f32 %v2130_v24 }
 0xcac   : > { %v3010_v25 = vpop.eup %3009 }
 0xcad   : > { %v2132_v26 = vmul.f32 %v3010_v25, %v3008_v14 }
 0xcaf   : > { %2836 = vmatmul.mubr.msk.f32.vlgmr.msra.gmra.mrb[28].mxu1 %vm547_vm2, %v2132_v26 }
 0xd82   : > { %v2202_v3 = vpop.f32.mrb[28].mxu1 }
 0xd83   : > { %v2837_v27 = vpop.f32.mrb[29].mxu1  ;;  %2847 = vmatmul.mubr.msk.f32.vlgmr.msra.gmra.mrb[16].mxu0 %vm547_vm2, %v2202_v3 }
 0xe56   : > { %v2287_v31 = vpop.f32.mrb[16].mxu0 }
 0xe57   : > { %v2291_v29 = vadd.f32 %v2287_v31, %v1791_v4  ;;  %v2848_v32 = vpop.f32.mrb[17].mxu0 }
 0xe59   : > { %v2298_v33 = vadd.f32 %v2532_v28, %v2291_v29 }
 0xe5b   : > { %2299 = vst.msk [vmem:[%s268_s13] sm:$0xff] %vm296_vm1, %v2298_v33 }
 0xe5c   : > { %3024 = shalt.err (!%p3021_p3)
}
 0xe5d   : > { %s3025_s26 = scalar_lea.hbm %s3584_s17, 128  ;;  %s3029_s10 = scalar_lea.hbm %s3633_s6, 256 }
 0xe5e   : > { %p3026_p4 = scmp.ne.s32.totalorder %s3584_s17, %s3025_s26  ;;  %p3030_p9 = scmp.lt.u32.totalorder %s3584_s17, %s3633_s6 }
 0xe5f   : > { %p3031_p10 = scmp.lt.u32.totalorder %s3029_s10, %s3025_s26  ;;  %p3033_p12 = scmp.lt.u32.totalorder %s3025_s26, %s3584_s17 }
 0xe60   : > { %p3027_p7 = pnand %p3026_p4, %p3152_p5 }
 0xe61   : > { %p3032_p11 = por %p3031_p10, %p3030_p9 }
 0xe62   : > { %p3028_p8 = pneg %p3027_p7 }
 0xe63   : > { %p3034_p13 = por %p3033_p12, %p3032_p11 }
 0xe65   : > { %p3035_p0 = pnand %p3034_p13, %p3028_p8 }
 0xe67   : > { %3038 = shalt.err (!%p3035_p0)
}
 0xe68   : > { %2953 = dma.vmem_to_hbm [thread:$0]  (%p3152_p5), %s3586_s14, 128, %s3584_s17, %s2301_s18  }
 0xe69 PF: > { %p2959_p1 = scmp.ge.s32.totalorder %s3073_s24, 2  ;;  %s2326_s13 = sand.u32 1, %s3061_s21  }
 0xe6a   : > { %s2327_s15 = scalar_lea.sflag [#allocation3], %s2326_s13 }
 0xe6b   : > { %p2956_p2 = pnand %p2959_p1, %p3156_p6 }
 0xe6d   : > { %3056 = dma.done.wait (!%p2956_p2), %s2327_s15, 128  }
 0xe6e   : > { %3058 = vsyncadd (!%p2956_p2), %s2327_s15, 4294967168  ;;  %p16_p3 = scmp.ge.s32.totalorder %s3139_s27, 4   ;;  %s3638_s21 = smov %s3065_s22 }
 0xe6f   : > { %s3639_s22 = smov %s3069_s23  ;;  %s3640_s23 = smov %s3150_s30 }
 0xe70   : > { %s3641_s24 = smov %s3139_s27  ;;  %18 = sbr.rel (!%p16_p3) target bundleno = 3 (0x3), region = 111 }
 0xe77   :  { %2332 = vsyncpa [#allocation3], 1 }
 0xe78   :  { %2334 = vsyncpa [#allocation3 + $0x1], 1 }

</bundles_post_ra>
